<compile_context>
chip_gen: v5e
topology: v5e:2x2
jax: 0.10.0
libtpu: 0.0.40
codegen_flags: <defaults>
</compile_context>

<pallas_src>
import jax
import jax.numpy as jnp
from jax import lax
from jax.experimental import pallas as pl
from jax.experimental.pallas import tpu as pltpu


# ----------------------------------------------------------------------------
# Tile selection
# ----------------------------------------------------------------------------
def _pick_tile(n, target, granularity):
    """Largest tile <= target that divides n and is a multiple of `granularity`,
    otherwise the full dimension (a full-extent block is always legal)."""
    if n <= target:
        return n
    t = (target // granularity) * granularity
    while t >= granularity:
        if n % t == 0:
            return t
        t -= granularity
    return n


# ----------------------------------------------------------------------------
# Hoisted coarse->fine projection: y = x @ W^T  (one tiny call per scale)
# ----------------------------------------------------------------------------
def _linear_t_kernel(x_ref, w_ref, o_ref):
    o_ref[...] = lax.dot_general(
        x_ref[...], w_ref[...],
        dimension_numbers=(((1,), (1,)), ((), ())),   # W is [out, in]; contract 'in'
        preferred_element_type=jnp.float32).astype(o_ref.dtype)


def _linear_t(x, w, tm_target=256):
    n, c = x.shape
    tm = _pick_tile(n, tm_target, 8)
    return pl.pallas_call(
        _linear_t_kernel,
        out_shape=jax.ShapeDtypeStruct((n, c), jnp.float32),
        grid=(n // tm,),
        in_specs=[pl.BlockSpec((tm, c), lambda m: (m, 0)),
                  pl.BlockSpec((c, c), lambda m: (0, 0))],
        out_specs=pl.BlockSpec((tm, c), lambda m: (m, 0)),
        compiler_params=pltpu.CompilerParams(
            dimension_semantics=("parallel",)),
    )(x, w)


# ----------------------------------------------------------------------------
# Fused per-scale kernel
# ----------------------------------------------------------------------------
def _make_scale_kernel(have_lower, have_higher, tm, c, n_next):
    """Fused kernel for one scale, specialized on which neighbor paths exist.

    Ref order: x_i, [clo, x_prev_aug, w_up]?, [chi, y_down]?, out, [psum]?
    """

    def kernel(*refs):
        p = 0
        x_ref = refs[p]; p += 1                    # (tm, C)
        if have_lower:
            clo_ref, xprev_ref, wup_ref = refs[p:p + 3]; p += 3
        if have_higher:
            chi_ref, ynext_ref = refs[p:p + 2]; p += 2
        out_ref = refs[p]; p += 1                  # (tm, C)
        if have_lower:
            psum_ref = refs[p]; p += 1             # (tm, C+1) sums + counts

        m = pl.program_id(0)
        k = pl.program_id(1)
        nk = pl.num_programs(1)

        # ---- bottom-up path: scatter_mean accumulation over fine-node tiles ----
        if have_lower:
            @pl.when(k == 0)
            def _init():
                psum_ref[...] = jnp.zeros_like(psum_ref)

            # one-hot[c_local, n] = (cluster[n] == global coarse row c) for this output tile;
            # (tm,1) sublane iota broadcast against the lane-dense (1, tf) cluster block.
            row_ids = m * tm + lax.broadcasted_iota(jnp.int32, (tm, 1), 0)
            onehot = (row_ids == clo_ref[...]).astype(jnp.float32)        # (tm, tf)
            # x_prev has a ones column appended -> one matmul gives sums AND counts.
            psum_ref[...] += jnp.dot(onehot, xprev_ref[...],
                                     preferred_element_type=jnp.float32)  # (tm, C+1)

        # ---- finalize: mean, fine->coarse linear, coarse->fine gather, residual add ----
        @pl.when(k == nk - 1)
        def _finalize():
            acc = x_ref[...].astype(jnp.float32)

            if have_lower:
                ps = psum_ref[...]                                        # (tm, C+1)
                cnt = ps[:, c:]                                           # (tm, 1)
                pooled = jnp.where(cnt > 0.0,
                                   ps[:, :c] / jnp.maximum(cnt, 1.0),
                                   0.0)
                # pooled @ W_up^T  (W is [out, in]); contract dim 1 with dim 1 in-kernel.
                acc = acc + lax.dot_general(
                    pooled, wup_ref[...],
                    dimension_numbers=(((1,), (1,)), ((), ())),
                    preferred_element_type=jnp.float32)

            if have_higher:
                # Vectorized row gather of the pre-projected coarse features via a
                # one-hot MXU matmul (N_next is the coarser scale, so it is moderate).
                chi = chi_ref[...]                                        # (tm, 1) int32
                lane_ids = lax.broadcasted_iota(jnp.int32, (1, n_next), 1)
                sel = (chi == lane_ids).astype(jnp.float32)               # (tm, N_next)
                acc = acc + jnp.dot(sel, ynext_ref[...],
                                    preferred_element_type=jnp.float32)   # (tm, C)

            out_ref[...] = acc.astype(out_ref.dtype)

    return kernel


# ----------------------------------------------------------------------------
# Forward pass
# ----------------------------------------------------------------------------
def interleave_mlp_forward(xs, clusters, w_up, w_down, *,
                           tm_target=256, tf_target=256, vmem_limit_mb=48):
    """
    xs:       list of node features per scale, xs[i]: [N_i, C]  (f32)
    clusters: clusters[j]: int32 [N_j], node at scale j -> cluster id at scale j+1
    w_up:     fine_to_coarse weights, w_up[j]:   [C, C]  (PyTorch Linear: [out, in])
    w_down:   coarse_to_fine weights, w_down[j]: [C, C]
    """
    scales = len(xs) - 1
    c = xs[0].shape[1]

    # Hoisted coarse->fine projections (one tiny matmul per scale).
    y_down = [_linear_t(xs[j + 1], w_down[j]) for j in range(scales)]

    # Layout plumbing (wrapper-side, once):
    clusters_row = [cl.astype(jnp.int32).reshape(1, -1) for cl in clusters]  # lane-dense, pooling
    clusters_col = [cl.astype(jnp.int32).reshape(-1, 1) for cl in clusters]  # per-tile gather ids
    # Ones column appended so the pooling matmul also produces counts.
    xs_aug = [jnp.concatenate([x, jnp.ones((x.shape[0], 1), jnp.float32)], axis=1)
              for x in xs]

    outs = []
    for i in range(scales + 1):
        n_i = xs[i].shape[0]
        have_lower = i > 0
        have_higher = i < scales

        tm = _pick_tile(n_i, tm_target, 8)     # output-row tile (sublane axis)
        grid_m = n_i // tm

        operands, in_specs, scratch = [], [], []

        operands.append(xs[i])
        in_specs.append(pl.BlockSpec((tm, c), lambda m, k: (m, 0)))

        if have_lower:
            n_prev = xs[i - 1].shape[0]
            tf = _pick_tile(n_prev, tf_target, 128)   # lane-dense cluster blocks
            grid_k = n_prev // tf
            operands.append(clusters_row[i - 1])
            in_specs.append(pl.BlockSpec((1, tf), lambda m, k: (0, k)))
            operands.append(xs_aug[i - 1])
            in_specs.append(pl.BlockSpec((tf, c + 1), lambda m, k: (k, 0)))
            operands.append(w_up[i - 1])
            in_specs.append(pl.BlockSpec((c, c), lambda m, k: (0, 0)))
            scratch.append(pltpu.VMEM((tm, c + 1), jnp.float32))  # pooled sums + counts
        else:
            grid_k = 1

        n_next = 0
        if have_higher:
            n_next = xs[i + 1].shape[0]
            operands.append(clusters_col[i])
            in_specs.append(pl.BlockSpec((tm, 1), lambda m, k: (m, 0)))
            operands.append(y_down[i])                               # plain 2-D, VMEM resident
            in_specs.append(pl.BlockSpec((n_next, c), lambda m, k: (0, 0)))

        kernel = _make_scale_kernel(have_lower, have_higher, tm, c, n_next)

        out = pl.pallas_call(
            kernel,
            out_shape=jax.ShapeDtypeStruct((n_i, c), jnp.float32),
            grid=(grid_m, grid_k),
            in_specs=in_specs,
            out_specs=pl.BlockSpec((tm, c), lambda m, k: (m, 0)),
            scratch_shapes=scratch,
            compiler_params=pltpu.CompilerParams(
                dimension_semantics=("parallel", "arbitrary"),
                vmem_limit_bytes=vmem_limit_mb * 1024 * 1024),
        )(*operands)
        outs.append(out)
    return outs


# ----------------------------------------------------------------------------
# Pure-JAX reference (for correctness check)
# ----------------------------------------------------------------------------
def _segment_mean(x, seg, num):
    s = jax.ops.segment_sum(x, seg, num_segments=num)
    cnt = jax.ops.segment_sum(jnp.ones((x.shape[0],), jnp.float32), seg,
                              num_segments=num)
    return jnp.where(cnt[:, None] > 0, s / jnp.maximum(cnt, 1.0)[:, None], 0.0)


def reference_forward(xs, clusters, w_up, w_down):
    scales = len(xs) - 1
    out = []
    for i in range(scales + 1):
        y = xs[i]
        if i > 0:
            pooled = _segment_mean(xs[i - 1], clusters[i - 1], xs[i].shape[0])
            y = y + pooled @ w_up[i - 1].T
        if i < scales:
            y = y + (xs[i + 1] @ w_down[i].T)[clusters[i]]
        out.append(y)
    return out


# ----------------------------------------------------------------------------
# Main
# ----------------------------------------------------------------------------
if __name__ == "__main__":
    key = jax.random.PRNGKey(0)
    channels = 32
    scales = 2                       # => 3 scale levels (original graph + 2)
    num_nodes = [256, 64, 16]        # N_0 (finest) ... N_scales (coarsest)

    keys = jax.random.split(key, 16)
    k_iter = iter(keys)

    xs = [jax.random.normal(next(k_iter), (n, channels), jnp.float32)
          for n in num_nodes]
    clusters = [
        jax.random.randint(next(k_iter), (num_nodes[j],), 0, num_nodes[j + 1],
                           dtype=jnp.int32)
        for j in range(scales)
    ]
    w_up = [0.1 * jax.random.normal(next(k_iter), (channels, channels),
                                    jnp.float32) for _ in range(scales)]
    w_down = [0.1 * jax.random.normal(next(k_iter), (channels, channels),
                                      jnp.float32) for _ in range(scales)]

    # Small tile targets so the multi-tile (parallel x reduction) grid path is
    # actually exercised at these demo sizes.
    outs = interleave_mlp_forward(xs, clusters, w_up, w_down,
                                  tm_target=32, tf_target=128)
    outs = [jax.block_until_ready(o) for o in outs]

    refs = reference_forward(xs, clusters, w_up, w_down)
    for o, r in zip(outs, refs):
        assert o.shape == r.shape
        err = jnp.max(jnp.abs(o - r))
        assert jnp.allclose(o, r, rtol=1e-4, atol=1e-4), \
            f"mismatch: max err {err}"

    print("KERNEL_OK")
</pallas_src>

<mosaic_0001>
module attributes {stable_mosaic.version = 11 : i64} {
  func.func @_linear_t_kernel(%arg0: i32, %arg1: memref<64x32xf32, #tpu.memory_space<vmem>>, %arg2: memref<32x32xf32, #tpu.memory_space<vmem>>, %arg3: memref<64x32xf32, #tpu.memory_space<vmem>>) attributes {dimension_semantics = [#tpu.dimension_semantics<parallel>], iteration_bounds = array<i64: 1>, scalar_prefetch = 0 : i64, scratch_operands = 0 : i64, tpu.core_type = #tpu.core_type<tc>, window_params = [{transform_indices = @transform_0, window_bounds = array<i64: 64, 32>}, {pipeline_mode = #tpu.pipeline_mode<synchronous>, transform_indices = @transform_1, window_bounds = array<i64: 32, 32>}, {transform_indices = @transform_2, window_bounds = array<i64: 64, 32>}]} {
    %c0 = arith.constant 0 : index
    %c0_0 = arith.constant 0 : index
    %0 = vector.load %arg1[%c0, %c0_0] : memref<64x32xf32, #tpu.memory_space<vmem>>, vector<64x32xf32>
    %c0_1 = arith.constant 0 : index
    %c0_2 = arith.constant 0 : index
    %1 = vector.load %arg2[%c0_1, %c0_2] : memref<32x32xf32, #tpu.memory_space<vmem>>, vector<32x32xf32>
    %cst = arith.constant dense<0.000000e+00> : vector<64x32xf32>
    %2 = tpu.matmul %0, %1, %cst {dimension_numbers = #tpu.dot_dimension_numbers<[1], [1], [0], [0], [0, 0, 1, 0], [], []>} : vector<64x32xf32>, vector<32x32xf32>, vector<64x32xf32> -> vector<64x32xf32>
    %c0_3 = arith.constant 0 : index
    %c0_4 = arith.constant 0 : index
    %3 = vector.load %arg3[%c0_3, %c0_4] : memref<64x32xf32, #tpu.memory_space<vmem>>, vector<64x32xf32>
    tpu.vector_store %arg3[%c0_3, %c0_4], %2 {strides = array<i32>} : memref<64x32xf32, #tpu.memory_space<vmem>>, vector<64x32xf32>,
    return
  }
  func.func @transform_0(%arg0: i32) -> (i32, i32) {
    %c0_i32 = arith.constant 0 : i32
    %c0_i32_0 = arith.constant 0 : i32
    return %arg0, %c0_i32 : i32, i32
  }
  func.func @transform_1(%arg0: i32) -> (i32, i32) {
    %c0_i32 = arith.constant 0 : i32
    %c0_i32_0 = arith.constant 0 : i32
    %c0_i32_1 = arith.constant 0 : i32
    return %c0_i32, %c0_i32_0 : i32, i32
  }
  func.func @transform_2(%arg0: i32) -> (i32, i32) {
    %c0_i32 = arith.constant 0 : i32
    %c0_i32_0 = arith.constant 0 : i32
    return %arg0, %c0_i32 : i32, i32
  }
}

</mosaic_0001>

<bundles_post_ra>
// kernel: tpu_custom_call.1
= control target key start
LH: loop header
LB: loop body
LE: loop exit
PB: predicated region body
PF: predicated region fallthrough
CT: control target
= control target key end

     0   :  { %vm23_vm0 = vcmask 261120   ;;  %s244_s1 = inlined_call_operand.vmem [shape: f32[32,32], index: 1, kind: input, shape index: {}]   ;;  %s245_s0 = inlined_call_operand.vmem [shape: f32[64,32], index: 0, kind: input, shape index: {}]   ;;  %s246_s2 = inlined_call_operand.vmem [shape: f32[64,32], index: 2, kind: output, shape index: {}]  }
   0x1   :  { %v22_v0 = vld [vmem:[%s244_s1 + $0x18] sm:$0xff]  ;;  %v21_v1 = vld [vmem:[%s244_s1 + $0x10] sm:$0xff]  ;;  %v20_v2 = vld [vmem:[%s244_s1 + $0x8] sm:$0xff] }
   0x2   :  { %126 = vmatpush.xpose.msk.msra.mxu2 %vm23_vm0, %v22_v0  ;;  %127 = vmatpush.xpose.msk.msra.mxu3 %vm23_vm0, %v22_v0  ;;  %v19_v3 = vld [vmem:[%s244_s1] sm:$0xff]  ;;  %v17_v5 = vld [vmem:[%s245_s0 + $0x30] sm:$0xff]  ;;  %v16_v8 = vld [vmem:[%s245_s0 + $0x28] sm:$0xff] }
   0x3   :  { %113 = vmatpush.xpose.msk.msra.mxu0 %vm23_vm0, %v22_v0  ;;  %125 = vmatpush.xpose.msk.msra.mxu1 %vm23_vm0, %v22_v0  ;;  %v15_v4 = vld [vmem:[%s245_s0 + $0x20] sm:$0xff]  ;;  %v13_v7 = vld [vmem:[%s245_s0 + $0x10] sm:$0xff]  ;;  %v18_v9 = vld [vmem:[%s245_s0 + $0x38] sm:$0xff] }
   0x4   :  { %v11_v6 = vld [vmem:[%s245_s0] sm:$0xff]  ;;  %v12_v10 = vld [vmem:[%s245_s0 + $0x8] sm:$0xff]  ;;  %v14_v11 = vld [vmem:[%s245_s0 + $0x18] sm:$0xff] }
   0x6   :  { %129 = vmatpush.xpose.msk.msra.mxu2 %vm23_vm0, %v21_v1  ;;  %130 = vmatpush.xpose.msk.msra.mxu3 %vm23_vm0, %v21_v1 }
   0x7   :  { %114 = vmatpush.xpose.msk.msra.mxu0 %vm23_vm0, %v21_v1  ;;  %128 = vmatpush.xpose.msk.msra.mxu1 %vm23_vm0, %v21_v1 }
   0xa   :  { %132 = vmatpush.xpose.msk.msra.mxu2 %vm23_vm0, %v20_v2  ;;  %133 = vmatpush.xpose.msk.msra.mxu3 %vm23_vm0, %v20_v2 }
   0xb   :  { %115 = vmatpush.xpose.msk.msra.mxu0 %vm23_vm0, %v20_v2  ;;  %131 = vmatpush.xpose.msk.msra.mxu1 %vm23_vm0, %v20_v2 }
   0xe   :  { %135 = vmatpush.xpose.msk.msra.mxu2 %vm23_vm0, %v19_v3  ;;  %136 = vmatpush.xpose.msk.msra.mxu3 %vm23_vm0, %v19_v3 }
   0xf   :  { %116 = vmatpush.xpose.msk.msra.mxu0 %vm23_vm0, %v19_v3  ;;  %134 = vmatpush.xpose.msk.msra.mxu1 %vm23_vm0, %v19_v3 }
  0x11   :  { %121 = vmatmul.msk.f32.vlgmr.msra.gmra.mxu2 %vm23_vm0, %v15_v4  ;;  %123 = vmatmul.msk.f32.vlgmr.msra.gmra.mxu3 %vm23_vm0, %v17_v5 }
  0x12   :  { %117 = vmatmul.msk.f32.vlgmr.msra.gmra.mxu0 %vm23_vm0, %v11_v6  ;;  %119 = vmatmul.msk.f32.vlgmr.msra.gmra.mxu1 %vm23_vm0, %v13_v7 }
  0x19   :  { %122 = vmatmul.msk.f32.gmra.mxu2 %vm23_vm0, %v16_v8  ;;  %124 = vmatmul.msk.f32.gmra.mxu3 %vm23_vm0, %v18_v9 }
  0x1a   :  { %118 = vmatmul.msk.f32.gmra.mxu0 %vm23_vm0, %v12_v10  ;;  %120 = vmatmul.msk.f32.gmra.mxu1 %vm23_vm0, %v14_v11 }
  0x8f   :  { %v77_v12 = vpop.f32.mrf.mxu0  ;;  %v83_v13 = vpop.f32.mrf.mxu1 }
  0x90   :  { %101 = vst.msk [vmem:[%s246_s2] sm:$0xff] %vm23_vm0, %v77_v12 }
  0x91   :  { %103 = vst.msk [vmem:[%s246_s2 + $0x10] sm:$0xff] %vm23_vm0, %v83_v13 }
  0x94   :  { %v89_v14 = vpop.f32.mrf.mxu2  ;;  %v95_v15 = vpop.f32.mrf.mxu3 }
  0x95   :  { %105 = vst.msk [vmem:[%s246_s2 + $0x20] sm:$0xff] %vm23_vm0, %v89_v14 }
  0x96   :  { %107 = vst.msk [vmem:[%s246_s2 + $0x30] sm:$0xff] %vm23_vm0, %v95_v15 }
  0x97   :  { %v80_v16 = vpop.f32.mrf.mxu0  ;;  %v86_v17 = vpop.f32.mrf.mxu1 }
  0x98   :  { %102 = vst.msk [vmem:[%s246_s2 + $0x8] sm:$0xff] %vm23_vm0, %v80_v16 }
  0x99   :  { %104 = vst.msk [vmem:[%s246_s2 + $0x18] sm:$0xff] %vm23_vm0, %v86_v17 }
  0x9c   :  { %v92_v18 = vpop.f32.mrf.mxu2  ;;  %v98_v19 = vpop.f32.mrf.mxu3 }
  0x9d   :  { %106 = vst.msk [vmem:[%s246_s2 + $0x28] sm:$0xff] %vm23_vm0, %v92_v18 }
  0x9e   :  { %108 = vst.msk [vmem:[%s246_s2 + $0x38] sm:$0xff] %vm23_vm0, %v98_v19 }

</bundles_post_ra>
